<compile_context>
chip_gen: v5e
topology: v5e:2x2
jax: 0.10.0
libtpu: 0.0.40
codegen_flags: <defaults>
</compile_context>

<pallas_src>
import functools

import jax
import jax.numpy as jnp
from jax import lax
from jax.experimental import pallas as pl
from jax.experimental.pallas import tpu as pltpu


def _rup(x, m):
    return (x + m - 1) // m * m


def _basic_block_kernel(x_ref, w1_ref, b1_ref, w2_ref, b2_ref, mask_ref,
                        o_ref, hpad_ref, *, R, L_store, G, cout_p, Bt):
    """Bt batch images per grid step.

    x_ref   : (Bt, cin_p, Lp_in)  bf16  zero-framed input, row stride R, flat
    w1_ref  : (2*cout_p, 9*cin_p) bf16  conv1(+bn1) taps; rows [cout_p:] = shortcut
    b1_ref  : (2*cout_p, 1)       f32
    w2_ref  : (cout_p, 9*cout_p)  bf16  conv2(+bn2) taps
    b2_ref  : (cout_p, 1)         f32
    mask_ref: (1, L_store)        f32   1.0 on valid positions (col<W and p<H*R)
    o_ref   : (Bt, cout_p, L_store)
    hpad_ref: (cout_p, 2*G+L_store) bf16 VMEM scratch (zero-framed hidden act)
    """
    mask = mask_ref[...]                                    # (1, L_store)

    # Zero the (lane-aligned) guard bands of the hidden-activation scratch.
    # Done every step: cheap, and safe under megacore grid splitting.
    hpad_ref[:, :G] = jnp.zeros((cout_p, G), jnp.bfloat16)
    hpad_ref[:, G + L_store:] = jnp.zeros((cout_p, G), jnp.bfloat16)

    base2 = G - (R + 1)
    for b in range(Bt):                                     # static unroll
        # ---- conv1 + bn1 (+ fused shortcut rows): 9-tap im2col from the ref --
        xs = jnp.concatenate(
            [x_ref[b, :, di * R + dj: di * R + dj + L_store]
             for di in range(3) for dj in range(3)], axis=0)   # (9*cin_p, L_store) bf16
        big = jnp.dot(w1_ref[...], xs, preferred_element_type=jnp.float32)
        big = big + b1_ref[...]                              # (2*cout_p, L_store) f32
        h1 = jnp.maximum(big[:cout_p], 0.0) * mask           # relu1, junk -> 0
        res = big[cout_p:]                                   # shortcut(x), f32

        # ---- zero-framed hidden activation lives in VMEM scratch -------------
        hpad_ref[:, G:G + L_store] = h1.astype(jnp.bfloat16)

        # ---- conv2 + bn2: 9-tap im2col read back from the scratch ------------
        hs = jnp.concatenate(
            [hpad_ref[:, base2 + di * R + dj: base2 + di * R + dj + L_store]
             for di in range(3) for dj in range(3)], axis=0)   # (9*cout_p, L_store) bf16
        out = jnp.dot(w2_ref[...], hs, preferred_element_type=jnp.float32)
        out = out + b2_ref[...]                              # dropout2 = identity

        # ---- residual add + final relu (lane-dense, unmasked store) ----------
        o_ref[b] = jnp.maximum(out + res, 0.0).astype(o_ref.dtype)


def _fold_bn(w, gamma, beta, mean, var, eps):
    scale = gamma * lax.rsqrt(var + eps)
    return w * scale[:, None, None, None], beta - mean * scale


def basic_block(x, w1, bn1, w2, bn2, shortcut=None, *, eps=1e-5,
                out_dtype=jnp.float32):
    """x: (B, Cin, H, W) f32.  w1: (Cout, Cin, 3, 3), w2: (Cout, Cout, 3, 3)
    (bias=False convs).  bn1/bn2/(bn_s): (gamma, beta, running_mean, running_var).
    shortcut: None (identity) or (w_s (Cout, Cin, 1, 1), bn_s)."""
    B, Cin, H, W = x.shape
    Cout = w1.shape[0]
    cin_p, cout_p = _rup(Cin, 8), _rup(Cout, 8)

    # Minimal per-row stride; pad only the total flattened length to x128.
    R = W + 2
    L = H * R
    L_store = _rup(L, 128)                 # lane-dense stored/computed length
    G = _rup(R + 1, 128)                   # zero-guard width around hidden act
    Lp_in = _rup(L_store + 2 * R + 2, 128)  # framed+flat-padded input length

    # ---- fold BN (inference running stats) into the conv weights ------------
    w1f, b1f = _fold_bn(w1, *bn1, eps)
    w2f, b2f = _fold_bn(w2, *bn2, eps)
    if shortcut is None:
        assert Cin == Cout, "identity shortcut requires in_planes == planes"
        wsf = jnp.eye(Cout, Cin, dtype=jnp.float32)
        bsf = jnp.zeros((Cout,), jnp.float32)
    else:
        ws, bns = shortcut
        wsf4, bsf = _fold_bn(ws, *bns, eps)
        wsf = wsf4[:, :, 0, 0]

    # ---- tap-stacked (im2col) weight matrices, channels padded to x8 --------
    def stack_taps(wf):
        co, c = wf.shape[:2]
        c_p = _rup(c, 8)
        wt = jnp.transpose(wf, (0, 2, 3, 1))                       # (co,3,3,c)
        wt = jnp.pad(wt, ((0, cout_p - co), (0, 0), (0, 0), (0, c_p - c)))
        return wt.reshape(cout_p, 9 * c_p)

    w1m = stack_taps(w1f)                                          # (cout_p, 9*cin_p)
    w2m = stack_taps(w2f).astype(jnp.bfloat16)                     # (cout_p, 9*cout_p)
    wsm = jnp.zeros((cout_p, 9 * cin_p), jnp.float32)
    wsm = wsm.at[:Cout, 4 * cin_p: 4 * cin_p + Cin].set(wsf)       # centre tap only
    w1big = jnp.concatenate([w1m, wsm], axis=0).astype(jnp.bfloat16)

    bbig = jnp.concatenate([jnp.pad(b1f, (0, cout_p - Cout)),
                            jnp.pad(bsf, (0, cout_p - Cout))]
                           )[:, None].astype(jnp.float32)          # (2*cout_p, 1)
    b2c = jnp.pad(b2f, (0, cout_p - Cout))[:, None].astype(jnp.float32)

    # ---- zero-framed, row-strided, flattened bf16 input ----------------------
    xp = jnp.pad(x, ((0, 0), (0, cin_p - Cin), (1, 1), (1, 1)))    # (B,cin_p,H+2,R)
    xp = xp.reshape(B, cin_p, (H + 2) * R)
    xp = jnp.pad(xp, ((0, 0), (0, 0), (0, Lp_in - (H + 2) * R))).astype(jnp.bfloat16)

    # valid-position mask: col < W within each row, and p < H*R (flat tail = 0)
    col_ok = (jnp.arange(R) < W).astype(jnp.float32)
    mask = jnp.pad(jnp.tile(col_ok, H), (0, L_store - L))[None, :]

    # ---- per-generation VMEM budget & batch-block size -----------------------
    try:
        vmem_cap = int(pltpu.get_tpu_info().vmem_capacity_bytes)
    except Exception:  # conservative fallback (v7x = 64 MiB per TC)
        vmem_cap = 64 * 1024 * 1024
    vmem_limit = max(32 * 1024 * 1024,
                     min(vmem_cap * 3 // 4, 100 * 1024 * 1024))

    out_bytes = jnp.dtype(out_dtype).itemsize
    per_image_io = 2 * (cin_p * Lp_in * 2 + cout_p * L_store * out_bytes)  # dbl-buffered
    fixed = ((2 * cout_p * 9 * cin_p + cout_p * 9 * cout_p + 3 * cout_p) * 2 * 2
             + cout_p * (2 * G + L_store) * 2
             + (9 * cin_p + 9 * cout_p) * L_store * 2
             + 4 * cout_p * L_store * 4)
    budget = min(vmem_limit // 2, 8 * 1024 * 1024)
    Bt = 1
    for d in range(1, B + 1):
        if B % d or d > 8:
            continue
        if B >= 2 and B // d < 2:      # keep grid >= 2 so both v7x TCs get work
            continue
        if fixed + d * per_image_io <= budget:
            Bt = d

    kernel = functools.partial(_basic_block_kernel, R=R, L_store=L_store, G=G,
                               cout_p=cout_p, Bt=Bt)

    grid_spec = pltpu.PrefetchScalarGridSpec(
        num_scalar_prefetch=0,
        grid=(B // Bt,),
        in_specs=[
            pl.BlockSpec((Bt, cin_p, Lp_in), lambda g: (g, 0, 0)),
            pl.BlockSpec((2 * cout_p, 9 * cin_p), lambda g: (0, 0)),
            pl.BlockSpec((2 * cout_p, 1), lambda g: (0, 0)),
            pl.BlockSpec((cout_p, 9 * cout_p), lambda g: (0, 0)),
            pl.BlockSpec((cout_p, 1), lambda g: (0, 0)),
            pl.BlockSpec((1, L_store), lambda g: (0, 0)),
        ],
        out_specs=pl.BlockSpec((Bt, cout_p, L_store), lambda g: (g, 0, 0)),
        scratch_shapes=[pltpu.VMEM((cout_p, 2 * G + L_store), jnp.bfloat16)],
    )

    out_flat = pl.pallas_call(
        kernel,
        out_shape=jax.ShapeDtypeStruct((B, cout_p, L_store), out_dtype),
        grid_spec=grid_spec,
        compiler_params=pltpu.CompilerParams(
            dimension_semantics=("parallel",),
            vmem_limit_bytes=vmem_limit),
    )(xp, w1big, bbig, w2m, b2c, mask)

    # Junk columns / tail are garbage by design; slice them off here.
    return out_flat[:, :Cout, :L].reshape(B, Cout, H, R)[:, :, :, :W]


def basic_block_reference(x, w1, bn1, w2, bn2, shortcut=None, *, eps=1e-5):
    """Pure-JAX replica of the PyTorch forward (inference; dropout = identity)."""
    dn = ("NCHW", "OIHW", "NCHW")

    def bn(y, p):
        g, b, m, v = p
        s = (g * lax.rsqrt(v + eps))[None, :, None, None]
        return (y - m[None, :, None, None]) * s + b[None, :, None, None]

    h = lax.conv_general_dilated(x, w1, (1, 1), [(1, 1), (1, 1)], dimension_numbers=dn)
    h = jnp.maximum(bn(h, bn1), 0.0)
    h = lax.conv_general_dilated(h, w2, (1, 1), [(1, 1), (1, 1)], dimension_numbers=dn)
    h = bn(h, bn2)
    if shortcut is None:
        s = x
    else:
        ws, bns = shortcut
        s = bn(lax.conv_general_dilated(x, ws, (1, 1), [(0, 0), (0, 0)],
                                        dimension_numbers=dn), bns)
    return jnp.maximum(h + s, 0.0)


if __name__ == "__main__":
    # BasicBlock(in_planes=4, planes=8, stride=1) -> conv1x1+BN shortcut path.
    B, Cin, Cout, H, W = 2, 4, 8, 16, 16

    key = jax.random.PRNGKey(0)
    ks = jax.random.split(key, 8)
    x = jax.random.normal(ks[0], (B, Cin, H, W), jnp.float32)
    w1 = jax.random.normal(ks[1], (Cout, Cin, 3, 3), jnp.float32) * (2.0 / (Cin * 9)) ** 0.5
    w2 = jax.random.normal(ks[2], (Cout, Cout, 3, 3), jnp.float32) * (2.0 / (Cout * 9)) ** 0.5
    ws = jax.random.normal(ks[3], (Cout, Cin, 1, 1), jnp.float32) * (2.0 / Cin) ** 0.5

    def bn_params(k):
        k1, k2, k3, k4 = jax.random.split(k, 4)
        gamma = 1.0 + 0.2 * jax.random.normal(k1, (Cout,), jnp.float32)
        beta = 0.1 * jax.random.normal(k2, (Cout,), jnp.float32)
        mean = 0.1 * jax.random.normal(k3, (Cout,), jnp.float32)
        var = jax.random.uniform(k4, (Cout,), jnp.float32, minval=0.5, maxval=1.5)
        return gamma, beta, mean, var

    bn1, bn2, bns = bn_params(ks[4]), bn_params(ks[5]), bn_params(ks[6])
    shortcut = (ws, bns)

    out = basic_block(x, w1, bn1, w2, bn2, shortcut)
    out = jax.block_until_ready(out)

    ref = basic_block_reference(x, w1, bn1, w2, bn2, shortcut)
    assert out.shape == (B, Cout, H, W)
    max_err = float(jnp.max(jnp.abs(out - ref)))
    # bf16 MXU operands (incl. the fused shortcut) with f32 accumulation.
    assert jnp.allclose(out, ref, atol=5e-2, rtol=5e-2), f"mismatch: {max_err}"
    print("KERNEL_OK")
</pallas_src>

<mosaic_0001>
module attributes {stable_mosaic.version = 11 : i64} {
  func.func @_basic_block_kernel(%arg0: i32, %arg1: memref<1x8x512xbf16, #tpu.memory_space<vmem>>, %arg2: memref<16x72xbf16, #tpu.memory_space<vmem>>, %arg3: memref<16x1xf32, #tpu.memory_space<vmem>>, %arg4: memref<8x72xbf16, #tpu.memory_space<vmem>>, %arg5: memref<8x1xf32, #tpu.memory_space<vmem>>, %arg6: memref<1x384xf32, #tpu.memory_space<vmem>>, %arg7: memref<1x8x384xf32, #tpu.memory_space<vmem>>, %arg8: memref<8x640xbf16, #tpu.memory_space<vmem>>) attributes {dimension_semantics = [#tpu.dimension_semantics<parallel>], iteration_bounds = array<i64: 2>, scalar_prefetch = 0 : i64, scratch_operands = 1 : i64, tpu.core_type = #tpu.core_type<tc>, window_params = [{transform_indices = @transform_0, window_bounds = array<i64: 1, 8, 512>}, {pipeline_mode = #tpu.pipeline_mode<synchronous>, transform_indices = @transform_1, window_bounds = array<i64: 16, 72>}, {pipeline_mode = #tpu.pipeline_mode<synchronous>, transform_indices = @transform_2, window_bounds = array<i64: 16, 1>}, {pipeline_mode = #tpu.pipeline_mode<synchronous>, transform_indices = @transform_3, window_bounds = array<i64: 8, 72>}, {pipeline_mode = #tpu.pipeline_mode<synchronous>, transform_indices = @transform_4, window_bounds = array<i64: 8, 1>}, {pipeline_mode = #tpu.pipeline_mode<synchronous>, transform_indices = @transform_5, window_bounds = array<i64: 1, 384>}, {transform_indices = @transform_6, window_bounds = array<i64: 1, 8, 384>}]} {
    %c0 = arith.constant 0 : index
    %c0_0 = arith.constant 0 : index
    %0 = vector.load %arg6[%c0, %c0_0] : memref<1x384xf32, #tpu.memory_space<vmem>>, vector<1x384xf32>
    %cst = arith.constant 0.000000e+00 : bf16
    %1 = vector.broadcast %cst : bf16 to vector<8x128xbf16>
    %c0_1 = arith.constant 0 : index
    %c0_2 = arith.constant 0 : index
    %2 = vector.load %arg8[%c0_1, %c0_2] : memref<8x640xbf16, #tpu.memory_space<vmem>>, vector<8x128xbf16>
    tpu.vector_store %arg8[%c0_1, %c0_2], %1 {strides = array<i32>} : memref<8x640xbf16, #tpu.memory_space<vmem>>, vector<8x128xbf16>,
    %cst_3 = arith.constant 0.000000e+00 : bf16
    %3 = vector.broadcast %cst_3 : bf16 to vector<8x128xbf16>
    %c0_4 = arith.constant 0 : index
    %c512 = arith.constant 512 : index
    %4 = vector.load %arg8[%c0_4, %c512] : memref<8x640xbf16, #tpu.memory_space<vmem>>, vector<8x128xbf16>
    tpu.vector_store %arg8[%c0_4, %c512], %3 {strides = array<i32>} : memref<8x640xbf16, #tpu.memory_space<vmem>>, vector<8x128xbf16>,
    %c0_5 = arith.constant 0 : index
    %c0_6 = arith.constant 0 : index
    %c0_7 = arith.constant 0 : index
    %5 = vector.load %arg1[%c0_5, %c0_6, %c0_7] : memref<1x8x512xbf16, #tpu.memory_space<vmem>>, vector<1x8x384xbf16>
    %6 = vector.shape_cast %5 : vector<1x8x384xbf16> to vector<8x384xbf16>
    %c0_8 = arith.constant 0 : index
    %c0_9 = arith.constant 0 : index
    %c1 = arith.constant 1 : index
    %7 = vector.load %arg1[%c0_8, %c0_9, %c1] : memref<1x8x512xbf16, #tpu.memory_space<vmem>>, vector<1x8x384xbf16>
    %8 = vector.shape_cast %7 : vector<1x8x384xbf16> to vector<8x384xbf16>
    %c0_10 = arith.constant 0 : index
    %c0_11 = arith.constant 0 : index
    %c2 = arith.constant 2 : index
    %9 = vector.load %arg1[%c0_10, %c0_11, %c2] : memref<1x8x512xbf16, #tpu.memory_space<vmem>>, vector<1x8x384xbf16>
    %10 = vector.shape_cast %9 : vector<1x8x384xbf16> to vector<8x384xbf16>
    %c0_12 = arith.constant 0 : index
    %c0_13 = arith.constant 0 : index
    %c18 = arith.constant 18 : index
    %11 = vector.load %arg1[%c0_12, %c0_13, %c18] : memref<1x8x512xbf16, #tpu.memory_space<vmem>>, vector<1x8x384xbf16>
    %12 = vector.shape_cast %11 : vector<1x8x384xbf16> to vector<8x384xbf16>
    %c0_14 = arith.constant 0 : index
    %c0_15 = arith.constant 0 : index
    %c19 = arith.constant 19 : index
    %13 = vector.load %arg1[%c0_14, %c0_15, %c19] : memref<1x8x512xbf16, #tpu.memory_space<vmem>>, vector<1x8x384xbf16>
    %14 = vector.shape_cast %13 : vector<1x8x384xbf16> to vector<8x384xbf16>
    %c0_16 = arith.constant 0 : index
    %c0_17 = arith.constant 0 : index
    %c20 = arith.constant 20 : index
    %15 = vector.load %arg1[%c0_16, %c0_17, %c20] : memref<1x8x512xbf16, #tpu.memory_space<vmem>>, vector<1x8x384xbf16>
    %16 = vector.shape_cast %15 : vector<1x8x384xbf16> to vector<8x384xbf16>
    %c0_18 = arith.constant 0 : index
    %c0_19 = arith.constant 0 : index
    %c36 = arith.constant 36 : index
    %17 = vector.load %arg1[%c0_18, %c0_19, %c36] : memref<1x8x512xbf16, #tpu.memory_space<vmem>>, vector<1x8x384xbf16>
    %18 = vector.shape_cast %17 : vector<1x8x384xbf16> to vector<8x384xbf16>
    %c0_20 = arith.constant 0 : index
    %c0_21 = arith.constant 0 : index
    %c37 = arith.constant 37 : index
    %19 = vector.load %arg1[%c0_20, %c0_21, %c37] : memref<1x8x512xbf16, #tpu.memory_space<vmem>>, vector<1x8x384xbf16>
    %20 = vector.shape_cast %19 : vector<1x8x384xbf16> to vector<8x384xbf16>
    %c0_22 = arith.constant 0 : index
    %c0_23 = arith.constant 0 : index
    %c38 = arith.constant 38 : index
    %21 = vector.load %arg1[%c0_22, %c0_23, %c38] : memref<1x8x512xbf16, #tpu.memory_space<vmem>>, vector<1x8x384xbf16>
    %22 = vector.shape_cast %21 : vector<1x8x384xbf16> to vector<8x384xbf16>
    %23 = tpu.concatenate %6, %8, %10, %12, %14, %16, %18, %20, %22 in 0 : vector<8x384xbf16>, vector<8x384xbf16>, vector<8x384xbf16>, vector<8x384xbf16>, vector<8x384xbf16>, vector<8x384xbf16>, vector<8x384xbf16>, vector<8x384xbf16>, vector<8x384xbf16> -> vector<72x384xbf16>
    %c0_24 = arith.constant 0 : index
    %c0_25 = arith.constant 0 : index
    %24 = vector.load %arg2[%c0_24, %c0_25] : memref<16x72xbf16, #tpu.memory_space<vmem>>, vector<16x72xbf16>
    %cst_26 = arith.constant dense<0.000000e+00> : vector<16x384xf32>
    %25 = tpu.matmul %24, %23, %cst_26 {dimension_numbers = #tpu.dot_dimension_numbers<[1], [0], [0], [1], [0, 0, 1, 1], [], []>} : vector<16x72xbf16>, vector<72x384xbf16>, vector<16x384xf32> -> vector<16x384xf32>
    %c0_27 = arith.constant 0 : index
    %c0_28 = arith.constant 0 : index
    %26 = vector.load %arg3[%c0_27, %c0_28] : memref<16x1xf32, #tpu.memory_space<vmem>>, vector<16x1xf32>
    %27 = vector.broadcast %26 : vector<16x1xf32> to vector<16x384xf32>
    %28 = arith.addf %25, %27 : vector<16x384xf32>
    %29 = vector.extract_strided_slice %28 {offsets = [0, 0], sizes = [8, 384], strides = [1, 1]} : vector<16x384xf32> to vector<8x384xf32>
    %cst_29 = arith.constant 0.000000e+00 : f32
    %30 = vector.broadcast %cst_29 : f32 to vector<8x384xf32>
    %31 = arith.maximumf %29, %30 : vector<8x384xf32>
    %32 = vector.broadcast %0 : vector<1x384xf32> to vector<8x384xf32>
    %33 = arith.mulf %31, %32 : vector<8x384xf32>
    %34 = vector.extract_strided_slice %28 {offsets = [8, 0], sizes = [8, 384], strides = [1, 1]} : vector<16x384xf32> to vector<8x384xf32>
    %35 = arith.truncf %33 : vector<8x384xf32> to vector<8x384xbf16>
    %c0_30 = arith.constant 0 : index
    %c128 = arith.constant 128 : index
    %36 = vector.load %arg8[%c0_30, %c128] : memref<8x640xbf16, #tpu.memory_space<vmem>>, vector<8x384xbf16>
    tpu.vector_store %arg8[%c0_30, %c128], %35 {strides = array<i32>} : memref<8x640xbf16, #tpu.memory_space<vmem>>, vector<8x384xbf16>,
    %c0_31 = arith.constant 0 : index
    %c109 = arith.constant 109 : index
    %37 = vector.load %arg8[%c0_31, %c109] : memref<8x640xbf16, #tpu.memory_space<vmem>>, vector<8x384xbf16>
    %c0_32 = arith.constant 0 : index
    %c110 = arith.constant 110 : index
    %38 = vector.load %arg8[%c0_32, %c110] : memref<8x640xbf16, #tpu.memory_space<vmem>>, vector<8x384xbf16>
    %c0_33 = arith.constant 0 : index
    %c111 = arith.constant 111 : index
    %39 = vector.load %arg8[%c0_33, %c111] : memref<8x640xbf16, #tpu.memory_space<vmem>>, vector<8x384xbf16>
    %c0_34 = arith.constant 0 : index
    %c127 = arith.constant 127 : index
    %40 = vector.load %arg8[%c0_34, %c127] : memref<8x640xbf16, #tpu.memory_space<vmem>>, vector<8x384xbf16>
    %c0_35 = arith.constant 0 : index
    %c128_36 = arith.constant 128 : index
    %41 = vector.load %arg8[%c0_35, %c128_36] : memref<8x640xbf16, #tpu.memory_space<vmem>>, vector<8x384xbf16>
    %c0_37 = arith.constant 0 : index
    %c129 = arith.constant 129 : index
    %42 = vector.load %arg8[%c0_37, %c129] : memref<8x640xbf16, #tpu.memory_space<vmem>>, vector<8x384xbf16>
    %c0_38 = arith.constant 0 : index
    %c145 = arith.constant 145 : index
    %43 = vector.load %arg8[%c0_38, %c145] : memref<8x640xbf16, #tpu.memory_space<vmem>>, vector<8x384xbf16>
    %c0_39 = arith.constant 0 : index
    %c146 = arith.constant 146 : index
    %44 = vector.load %arg8[%c0_39, %c146] : memref<8x640xbf16, #tpu.memory_space<vmem>>, vector<8x384xbf16>
    %c0_40 = arith.constant 0 : index
    %c147 = arith.constant 147 : index
    %45 = vector.load %arg8[%c0_40, %c147] : memref<8x640xbf16, #tpu.memory_space<vmem>>, vector<8x384xbf16>
    %46 = tpu.concatenate %37, %38, %39, %40, %41, %42, %43, %44, %45 in 0 : vector<8x384xbf16>, vector<8x384xbf16>, vector<8x384xbf16>, vector<8x384xbf16>, vector<8x384xbf16>, vector<8x384xbf16>, vector<8x384xbf16>, vector<8x384xbf16>, vector<8x384xbf16> -> vector<72x384xbf16>
    %c0_41 = arith.constant 0 : index
    %c0_42 = arith.constant 0 : index
    %47 = vector.load %arg4[%c0_41, %c0_42] : memref<8x72xbf16, #tpu.memory_space<vmem>>, vector<8x72xbf16>
    %cst_43 = arith.constant dense<0.000000e+00> : vector<8x384xf32>
    %48 = tpu.matmul %47, %46, %cst_43 {dimension_numbers = #tpu.dot_dimension_numbers<[1], [0], [0], [1], [0, 0, 1, 1], [], []>} : vector<8x72xbf16>, vector<72x384xbf16>, vector<8x384xf32> -> vector<8x384xf32>
    %c0_44 = arith.constant 0 : index
    %c0_45 = arith.constant 0 : index
    %49 = vector.load %arg5[%c0_44, %c0_45] : memref<8x1xf32, #tpu.memory_space<vmem>>, vector<8x1xf32>
    %50 = vector.broadcast %49 : vector<8x1xf32> to vector<8x384xf32>
    %51 = arith.addf %48, %50 : vector<8x384xf32>
    %52 = arith.addf %51, %34 : vector<8x384xf32>
    %cst_46 = arith.constant 0.000000e+00 : f32
    %53 = vector.broadcast %cst_46 : f32 to vector<8x384xf32>
    %54 = arith.maximumf %52, %53 : vector<8x384xf32>
    %c0_47 = arith.constant 0 : index
    %c0_48 = arith.constant 0 : index
    %c0_49 = arith.constant 0 : index
    %55 = vector.load %arg7[%c0_47, %c0_48, %c0_49] : memref<1x8x384xf32, #tpu.memory_space<vmem>>, vector<1x8x384xf32>
    %56 = vector.shape_cast %55 : vector<1x8x384xf32> to vector<8x384xf32>
    %57 = vector.shape_cast %54 : vector<8x384xf32> to vector<1x8x384xf32>
    tpu.vector_store %arg7[%c0_47, %c0_48, %c0_49], %57 {strides = array<i32>} : memref<1x8x384xf32, #tpu.memory_space<vmem>>, vector<1x8x384xf32>,
    return
  }
  func.func @transform_0(%arg0: i32) -> (i32, i32, i32) {
    %c0_i32 = arith.constant 0 : i32
    %c0_i32_0 = arith.constant 0 : i32
    %c0_i32_1 = arith.constant 0 : i32
    return %arg0, %c0_i32, %c0_i32_0 : i32, i32, i32
  }
  func.func @transform_1(%arg0: i32) -> (i32, i32) {
    %c0_i32 = arith.constant 0 : i32
    %c0_i32_0 = arith.constant 0 : i32
    %c0_i32_1 = arith.constant 0 : i32
    return %c0_i32, %c0_i32_0 : i32, i32
  }
  func.func @transform_2(%arg0: i32) -> (i32, i32) {
    %c0_i32 = arith.constant 0 : i32
    %c0_i32_0 = arith.constant 0 : i32
    %c0_i32_1 = arith.constant 0 : i32
    return %c0_i32, %c0_i32_0 : i32, i32
  }
  func.func @transform_3(%arg0: i32) -> (i32, i32) {
    %c0_i32 = arith.constant 0 : i32
    %c0_i32_0 = arith.constant 0 : i32
    %c0_i32_1 = arith.constant 0 : i32
    return %c0_i32, %c0_i32_0 : i32, i32
  }
  func.func @transform_4(%arg0: i32) -> (i32, i32) {
    %c0_i32 = arith.constant 0 : i32
    %c0_i32_0 = arith.constant 0 : i32
    %c0_i32_1 = arith.constant 0 : i32
    return %c0_i32, %c0_i32_0 : i32, i32
  }
  func.func @transform_5(%arg0: i32) -> (i32, i32) {
    %c0_i32 = arith.constant 0 : i32
    %c0_i32_0 = arith.constant 0 : i32
    %c0_i32_1 = arith.constant 0 : i32
    return %c0_i32, %c0_i32_0 : i32, i32
  }
  func.func @transform_6(%arg0: i32) -> (i32, i32, i32) {
    %c0_i32 = arith.constant 0 : i32
    %c0_i32_0 = arith.constant 0 : i32
    %c0_i32_1 = arith.constant 0 : i32
    return %arg0, %c0_i32, %c0_i32_0 : i32, i32, i32
  }
}

</mosaic_0001>

<bundles_post_ra>
// kernel: tpu_custom_call.1
= control target key start
LH: loop header
LB: loop body
LE: loop exit
PB: predicated region body
PF: predicated region fallthrough
CT: control target
= control target key end

     0   :  { %11 = vsyncpa [#allocation4], 0  ;;  %s1546_s0 = inlined_call_operand.hbm [shape: bf16[2,8,512], index: 0, kind: input, shape index: {}]   ;;  %s1547_s1 = inlined_call_operand.vmem [shape: bf16[16,72], index: 1, kind: input, shape index: {}]   ;;  %s1548_s2 = inlined_call_operand.vmem [shape: f32[16,1], index: 2, kind: input, shape index: {}]   ;;  %s1549_s3 = inlined_call_operand.vmem [shape: bf16[8,72], index: 3, kind: input, shape index: {}]   ;;  %s1550_s4 = inlined_call_operand.vmem [shape: f32[8,1], index: 4, kind: input, shape index: {}]   ;;  %s1551_s5 = inlined_call_operand.vmem [shape: f32[1,384], index: 5, kind: input, shape index: {}]   ;;  %s1552_s6 = inlined_call_operand.hbm [shape: f32[2,8,384], index: 6, kind: output, shape index: {}]  }
   0x1   :  { %13 = vsyncpa [#allocation4 + $0x1], 0 }
   0x2   :  { %14 = vsyncpa [#allocation5], 0 }
   0x3   :  { %16 = vsyncpa [#allocation5 + $0x1], 0  ;;  %s1164_s21 = smov 0   ;;  %s1166_s22 = smov 0  }
   0x4   :  { %s1168_s23 = smov 0   ;;  %s1170_s24 = smov 0  }
   0x5 LB: > { %s1185_s25 = sadd.s32 4294967295, %s1117_s24   ;;  %s937_s26 = sadd.s32 4294967294, %s1117_s24   ;;  %s1117_s24 = sphi %s1170_s24, %s1562_s24   ;;  %s1113_s23 = sphi %s1168_s23, %s1561_s23   ;;  %s1109_s22 = sphi %s1166_s22, %s1560_s22   ;;  %s1105_s21 = sphi %s1164_s21, %s1559_s21  }
   0x6   : > { %s1189_s27 = sadd.s32 1, %s1117_s24   ;;  %s29_s28 = sadd.s32 1, %s1113_s23 }
   0x7   : > { %s26_s29 = ssub.s32 %s1117_s24, %s1189_s27  ;;  %p36_p0 = scmp.ne.s32.totalorder %s1113_s23, %s1109_s22 }
   0x8   : > { %p27_p1 = scmp.eq.s32.totalorder %s26_s29, 0  ;;  %p37_p2 = scmp.eq.s32.totalorder %s1117_s24, 0 }
   0x9   : > { %p42_p3 = scmp.ne.s32.totalorder %s1109_s22, %s1105_s21  ;;  %p43_p4 = scmp.eq.s32.totalorder %s1185_s25, 0 }
   0xa   : > { %s1201_s30 = scalar_select %p27_p1, %s1113_s23, %s29_s28  }
   0xb   : > { %p1203_p5 = por %p37_p2, %p36_p0  ;;  %p1207_p6 = por %p43_p4, %p42_p3 }
   0xc   : > { %p171_p7 = scmp.eq.s32.totalorder %s1185_s25, 1  ;;  %p177_p8 = scmp.eq.s32.totalorder %s937_s26, 1 }
   0xd   : > { %p974_p10 = scmp.lt.s32.totalorder %s1117_s24, 2  ;;  %s212_s11 = sand.u32 1, %s1113_s23  }
   0xe   : > { %p1214_p11 = por %p171_p7, %p36_p0  ;;  %p1218_p12 = por %p177_p8, %p42_p3 }
   0xf   : > { %s958_s12 = sshll.u32 %s1117_s24, 4  ;;  %s940_s13 = sshll.u32 %s212_s11, 4 }
  0x10   : > { %s221_s16 = scalar_lea.hbm %s1546_s0, %s958_s12  ;;  %s216_s18 = scalar_lea.vmem [#allocation3], %s940_s13 }
  0x11   : > { %s223_s17 = sshll.u32 %s221_s16, 4  ;;  %s225_s19 = sshll.u32 %s216_s18, 4  ;;  %s224_s17 = int_to_ptr.hbm [resolvable:$true] %s223_s17  ;;  %s226_s19 = int_to_ptr.vmem [resolvable:$true] %s225_s19 }
  0x12   : > { %p1229_p13 = pnand %p974_p10, %p1203_p5  ;;  %p943_p0 = scmp.ge.s32.totalorder %s1117_s24, 1 }
  0x13   : > { %p230_p1 = scmp.lt.s32.totalorder %s1117_s24, 3  ;;  %s213_s26 = scalar_lea.sflag [#allocation4], %s212_s11 }
  0x14   : > { %s1021_s28 = sshra.s32 %s224_s17, 4  ;;  %p1025_p3 = pneg %p1229_p13  ;;  %s1022_s28 = int_to_ptr.hbm [resolvable:$true] %s1021_s28 }
  0x15   : > { %s1023_s29 = scalar_lea.hbm %s1022_s28, 16  ;;  %s1028_s7 = scalar_lea.hbm %s1546_s0, 32 }
  0x16   : > { %p1024_p2 = scmp.ne.s32.totalorder %s1022_s28, %s1023_s29  ;;  %p1029_p5 = scmp.lt.s32.totalorder %s1022_s28, %s1546_s0 }
  0x17   : > { %p1030_p8 = scmp.lt.s32.totalorder %s1028_s7, %s1023_s29 }
  0x18   : > { %p1026_p4 = pnand %p1025_p3, %p1024_p2 }
  0x19   : > { %p1031_p10 = por %p1030_p8, %p1029_p5 }
  0x1a   : > { %p1027_p7 = pneg %p1026_p4 }
  0x1c   : > { %p1032_p9 = pnand %p1031_p10, %p1027_p7 }
  0x1e   : > { %1035 = shalt.err (!%p1032_p9)
}
  0x1f   : > { %969 = dma.hbm_to_vmem [thread:$0]  (!%p1229_p13), %s224_s17, 256, %s226_s19, %s213_s26  }
  0x20   : > { %p231_p2 = pnand %p943_p0, %p230_p1 }
  0x21   : > { %s1250_s11 = sand.u32 (!%p231_p2), 1, %s1109_s22  }
  0x22   : > { %234 = sbr.rel (%p231_p2) target bundleno = 836 (0x344), region = 44  ;;  %s944_s16 = sshll.u32 (!%p231_p2), %s1250_s11, 4 }
  0x23   : > { %s237_s18 = scalar_lea.sflag (!%p231_p2), [#allocation4], %s1250_s11  ;;  %s1254_s28 = scalar_lea.vmem (!%p231_p2), [#allocation3], %s944_s16 }
  0x27   : > { %1096 = dma.done.wait (%p1207_p6), %s237_s18, 256  }
  0x28   : > { %1098 = vsyncadd (%p1207_p6), %s237_s18, 4294967040  ;;  %v277_v0 = vld [vmem:[%s1254_s28 + $0x8] sm:$0xff]  ;;  %v276_v1 = vld [vmem:[%s1254_s28] sm:$0xff]  ;;  %s1119_s17 = smov 90   ;;  %s1120_s19 = smov 92   ;;  %vm388_vm0 = vcmask 736256  }
  0x29   : > { %v290_v2 = vunpack.c.l.b16 %v277_v0  ;;  %v288_v3 = vunpack.c.l.b16 %v276_v1  ;;  %v291_v6 = vunpack.c.h.b16 %v277_v0  ;;  %v289_v7 = vunpack.c.h.b16 %v276_v1  ;;  %s1121_s8 = smov 91   ;;  %s1122_s20 = smov 109   ;;  %v443_v56 = vld [vmem:[%s1548_s2] sm:$0xff] }
  0x2a   : > { %s1123_s26 = smov 108   ;;  %s1124_s29 = smov 126   ;;  %vm392_vm1 = vcmask 1043456   ;;  %vm364_vm2 = vcmask 752640   ;;  %vm376_vm3 = vcmask 744448   ;;  %vm340_vm4 = vcmask 891904  }
  0x2b   : > { %v294_v4 = vpack.c.b16 %v290_v2, %v290_v2  ;;  %v1262_v5 = vpack.c.b16 %v288_v3, %v288_v3  ;;  %v295_v8 = vpack.c.b16 %v291_v6, %v291_v6  ;;  %v1269_v9 = vpack.c.b16 %v289_v7, %v289_v7  ;;  %s1125_s12 = smov 110   ;;  %s1126_s13 = smov 127   ;;  %v275_v7 = vld [vmem:[%s1254_s28 + $0x8] sm:$0xf] }
  0x2c   : > { %vm352_vm5 = vcmask 883712   ;;  %v1127_v57 = vmov 0   ;;  %vm316_vm6 = vcmask 1031168   ;;  %vm328_vm7 = vcmask 900096   ;;  %s961_s7 = smul.u32 24, %s1185_s25 }
  0x2d   : > { %384 = vrot.lane.b32.xlu1 %v294_v4, %s1119_s17  ;;  %380 = vrot.lane.b32.xlu0 %v1262_v5, %s1119_s17  ;;  %272 = vst [vmem:[#allocation2] sm:$0xf] %v1127_v57  ;;  %vm304_vm8 = vcmask 1039360   ;;  %vm460_vm9 = vcmask 588800   ;;  %vm762_vm10 = vcmask 154624  }
  0x2e   : > { %356 = vrot.lane.b32.xlu2 %v1262_v5, %s1120_s19  ;;  %1019 = vset.pattern.permute.xlu0 %v1127_v57  ;;  %273 = vst [vmem:[#allocation2 + $0x10] sm:$0xf] %v1127_v57  ;;  %s862_s16 = scalar_lea.hbm %s1552_s6, %s961_s7 }
  0x2f   : > { %1018 = vset.pattern.permute.xlu2 %v1127_v57  ;;  %1020 = vset.pattern.permute.xlu1 %v1127_v57  ;;  %s866_s28 = sshll.u32 %s862_s16, 4  ;;  %s867_s28 = int_to_ptr.hbm [resolvable:$true] %s866_s28 }
  0x35   : > { %386 = vrot.lane.b32.xlu1 %v295_v8, %s1119_s17  ;;  %382 = vrot.lane.b32.xlu0 %v1269_v9, %s1119_s17 }
  0x36   : > { %358 = vrot.lane.b32.xlu2 %v1269_v9, %s1120_s19 }
  0x3d   : > { %362 = vrot.lane.b32.xlu1 %v295_v8, %s1120_s19  ;;  %360 = vrot.lane.b32.xlu0 %v294_v4, %s1120_s19 }
  0x3e   : > { %368 = vrot.lane.b32.xlu2 %v1262_v5, %s1121_s8 }
  0x45   : > { %372 = vrot.lane.b32.xlu1 %v294_v4, %s1121_s8  ;;  %370 = vrot.lane.b32.xlu0 %v1269_v9, %s1121_s8 }
  0x46   : > { %374 = vrot.lane.b32.xlu2 %v295_v8, %s1121_s8 }
  0x4d   : > { %334 = vrot.lane.b32.xlu1 %v1269_v9, %s1122_s20  ;;  %332 = vrot.lane.b32.xlu0 %v1262_v5, %s1122_s20 }
  0x4e   : > { %336 = vrot.lane.b32.xlu2 %v294_v4, %s1122_s20 }
  0x55   : > { %344 = vrot.lane.b32.xlu1 %v1262_v5, %s1123_s26  ;;  %338 = vrot.lane.b32.xlu0 %v295_v8, %s1122_s20 }
  0x56   : > { %346 = vrot.lane.b32.xlu2 %v1269_v9, %s1123_s26 }
  0x5d   : > { %350 = vrot.lane.b32.xlu1 %v295_v8, %s1123_s26  ;;  %348 = vrot.lane.b32.xlu0 %v294_v4, %s1123_s26 }
  0x5e   : > { %308 = vrot.lane.b32.xlu2 %v1262_v5, %s1124_s29 }
  0x65   : > { %312 = vrot.lane.b32.xlu1 %v294_v4, %s1124_s29  ;;  %310 = vrot.lane.b32.xlu0 %v1269_v9, %s1124_s29 }
  0x66   : > { %314 = vrot.lane.b32.xlu2 %v295_v8, %s1124_s29 }
  0x6d   : > { %322 = vrot.lane.b32.xlu1 %v1269_v9, %s1125_s12  ;;  %320 = vrot.lane.b32.xlu0 %v1262_v5, %s1125_s12 }
  0x6e   : > { %324 = vrot.lane.b32.xlu2 %v294_v4, %s1125_s12 }
  0x75   : > { %296 = vrot.lane.b32.xlu1 %v1262_v5, %s1126_s13  ;;  %326 = vrot.lane.b32.xlu0 %v295_v8, %s1125_s12 }
  0x76   : > { %298 = vrot.lane.b32.xlu2 %v1269_v9, %s1126_s13 }
  0x7d   : > { %302 = vrot.lane.b32.xlu1 %v295_v8, %s1126_s13  ;;  %300 = vrot.lane.b32.xlu0 %v294_v4, %s1126_s13 }
  0x7e   : > { %447 = vperm.xlu2 %1018, %v443_v56  }
  0x88   : > { %v357_v10 = vpop.permute.xlu2 %356 }
  0x90   : > { %v359_v11 = vpop.permute.xlu2 %358 }
  0x91   : > { %v365_v27 = vsel %vm364_vm2, %v357_v10, %v359_v11 }
  0x98   : > { %v369_v12 = vpop.permute.xlu2 %368 }
  0x9f   : > { %v385_v13 = vpop.permute.xlu1 %384  ;;  %v381_v14 = vpop.permute.xlu0 %380 }
  0xa0   : > { %v375_v20 = vpop.permute.xlu2 %374 }
  0xa7   : > { %v387_v15 = vpop.permute.xlu1 %386  ;;  %v383_v16 = vpop.permute.xlu0 %382 }
  0xa8   : > { %v389_v17 = vsel %vm388_vm0, %v381_v14, %v383_v16  ;;  %v390_v18 = vsel %vm388_vm0, %v383_v16, %v385_v13  ;;  %v391_v19 = vsel %vm388_vm0, %v385_v13, %v387_v15  ;;  %v337_v26 = vpop.permute.xlu2 %336  ;;  %v959_v16 = vld [vmem:[%s1547_s1] sm:$0xff] }
  0xa9   : > { %v465_v21 = vsel %vm392_vm1, %v389_v17, 0  ;;  %v468_v22 = vsel %vm392_vm1, %v390_v18, 0  ;;  %v471_v23 = vsel %vm392_vm1, %v391_v19, 0  ;;  %v282_v17 = vunpack.c.l.b16 %v275_v7 }
  0xaa   : > { %476 = vmatpush.bf16.msra.mxu0 %v465_v21  ;;  %490 = vmatpush.bf16.msra.mxu1 %v468_v22 }
  0xab   : > { %504 = vmatpush.bf16.msra.mxu2 %v471_v23  ;;  %v285_v18 = vpack.c.b16 %v282_v17, %v282_v17 }
  0xaf   : > { %v363_v24 = vpop.permute.xlu1 %362  ;;  %v361_v25 = vpop.permute.xlu0 %360 }
  0xb0   : > { %v366_v28 = vsel %vm364_vm2, %v359_v11, %v361_v25  ;;  %v367_v31 = vsel %vm364_vm2, %v361_v25, %v363_v24  ;;  %v347_v38 = vpop.permute.xlu2 %346 }
  0xb7   : > { %v373_v29 = vpop.permute.xlu1 %372  ;;  %v371_v30 = vpop.permute.xlu0 %370 }
  0xb8   : > { %v379_v32 = vsel %vm376_vm3, %v373_v29, %v375_v20  ;;  %v377_v33 = vsel %vm376_vm3, %v369_v12, %v371_v30  ;;  %v378_v34 = vsel %vm376_vm3, %v371_v30, %v373_v29  ;;  %v309_v41 = vpop.permute.xlu2 %308 }
  0xb9   : > { %v431_v35 = vsel %vm392_vm1, %v365_v27, %v377_v33  ;;  %v435_v36 = vsel %vm392_vm1, %v366_v28, %v378_v34  ;;  %v439_v37 = vsel %vm392_vm1, %v367_v31, %v379_v32  ;;  %v271_v27 = vld [vmem:[%s1551_s5] sm:$0x7] }
  0xba   : > { %477 = vmatpush.bf16.msra.mxu0 %v431_v35  ;;  %491 = vmatpush.bf16.msra.mxu1 %v435_v36  ;;  %v519_v29 = vperm.slane %v271_v27, 0 }
  0xbb   : > { %505 = vmatpush.bf16.msra.mxu2 %v439_v37 }
  0xbf   : > { %v335_v39 = vpop.permute.xlu1 %334  ;;  %v333_v40 = vpop.permute.xlu0 %332 }
  0xc0   : > { %v341_v44 = vsel %vm340_vm4, %v333_v40, %v335_v39  ;;  %v342_v49 = vsel %vm340_vm4, %v335_v39, %v337_v26  ;;  %v315_v55 = vpop.permute.xlu2 %314 }
  0xc7   : > { %v345_v42 = vpop.permute.xlu1 %344  ;;  %v339_v43 = vpop.permute.xlu0 %338 }
  0xc8   : > { %v353_v45 = vsel %vm352_vm5, %v345_v42, %v347_v38  ;;  %v343_v50 = vsel %vm340_vm4, %v337_v26, %v339_v43  ;;  %v325_v60 = vpop.permute.xlu2 %324 }
  0xc9   : > { %v419_v46 = vsel %vm392_vm1, %v341_v44, %v353_v45 }
  0xca   : > { %478 = vmatpush.bf16.msra.mxu0 %v419_v46 }
  0xcf   : > { %v351_v47 = vpop.permute.xlu1 %350  ;;  %v349_v48 = vpop.permute.xlu0 %348 }
  0xd0   : > { %v354_v51 = vsel %vm352_vm5, %v347_v38, %v349_v48  ;;  %v355_v52 = vsel %vm352_vm5, %v349_v48, %v351_v47  ;;  %v299_v6 = vpop.permute.xlu2 %298  ;;  %v521_v38 = vperm.slane %v271_v27, 2 }
  0xd1   : > { %v423_v53 = vsel %vm392_vm1, %v342_v49, %v354_v51  ;;  %v427_v54 = vsel %vm392_vm1, %v343_v50, %v355_v52 }
  0xd2   : > { %492 = vmatpush.bf16.msra.mxu1 %v423_v53  ;;  %506 = vmatpush.bf16.msra.mxu2 %v427_v54 }
  0xd7   : > { %v313_v58 = vpop.permute.xlu1 %312  ;;  %v311_v59 = vpop.permute.xlu0 %310 }
  0xd8   : > { %v317_v63 = vsel %vm316_vm6, %v309_v41, %v311_v59  ;;  %v318_v0 = vsel %vm316_vm6, %v311_v59, %v313_v58  ;;  %v319_v11 = vsel %vm316_vm6, %v313_v58, %v315_v55  ;;  %v448_v24 = vpop.permute.xlu2 %447 }
  0xdf   : > { %v323_v61 = vpop.permute.xlu1 %322  ;;  %v321_v62 = vpop.permute.xlu0 %320 }
  0xe0   : > { %v330_v1 = vsel %vm328_vm7, %v323_v61, %v325_v60  ;;  %v329_v2 = vsel %vm328_vm7, %v321_v62, %v323_v61 }
  0xe1   : > { %v407_v3 = vsel %vm392_vm1, %v317_v63, %v329_v2  ;;  %v411_v4 = vsel %vm392_vm1, %v318_v0, %v330_v1 }
  0xe2   : > { %479 = vmatpush.bf16.msra.mxu0 %v407_v3  ;;  %493 = vmatpush.bf16.msra.mxu1 %v411_v4 }
  0xe7   : > { %v297_v8 = vpop.permute.xlu1 %296  ;;  %v327_v10 = vpop.permute.xlu0 %326 }
  0xe8   : > { %v305_v12 = vsel %vm304_vm8, %v297_v8, %v299_v6  ;;  %v331_v13 = vsel %vm328_vm7, %v325_v60, %v327_v10 }
  0xe9   : > { %v395_v14 = vsel %vm392_vm1, %v1262_v5, %v305_v12  ;;  %v415_v15 = vsel %vm392_vm1, %v319_v11, %v331_v13 }
  0xea   : > { %480 = vmatpush.bf16.msra.mxu0 %v395_v14  ;;  %507 = vmatpush.bf16.msra.mxu2 %v415_v15 }
  0xed   : > { %949 = vmatmul.msk.bf16.vlgmr.msra.gmra.mxu0 %vm460_vm9, %v959_v16 }
  0xef   : > { %v303_v19 = vpop.permute.xlu1 %302  ;;  %v301_v20 = vpop.permute.xlu0 %300 }
  0xf0   : > { %v306_v21 = vsel %vm304_vm8, %v299_v6, %v301_v20  ;;  %v307_v22 = vsel %vm304_vm8, %v301_v20, %v303_v19 }
  0xf1   : > { %v399_v5 = vsel %vm392_vm1, %v1269_v9, %v306_v21  ;;  %v403_v23 = vsel %vm392_vm1, %v285_v18, %v307_v22  ;;  %v520_v9 = vperm.slane %v271_v27, 1 }
  0xf2   : > { %494 = vmatpush.bf16.msra.mxu1 %v399_v5  ;;  %508 = vmatpush.bf16.msra.mxu2 %v403_v23 }
  0xf5   : > { %950 = vmatmul.msk.bf16.vlgmr.msra.gmra.mxu1 %vm460_vm9, %v959_v16  ;;  %951 = vmatmul.msk.bf16.vlgmr.msra.gmra.mxu2 %vm460_vm9, %v959_v16 }
 0x16a   : > { %v482_v25 = vpop.f32.mrf.mxu0 }
 0x16b   : > { %v483_v26 = vadd.f32 %v482_v25, %v448_v24 }
 0x16d   : > { %v515_v28 = vmax.f32 %v483_v26, 0.0 }
 0x16f   : > { %v525_v32 = vmul.f32 %v519_v29, %v515_v28 }
 0x172   : > { %v496_v30 = vpop.f32.mrf.mxu1 }
 0x173   : > { %v497_v31 = vadd.f32 %v496_v30, %v448_v24 }
 0x175   : > { %v516_v33 = vmax.f32 %v497_v31, 0.0 }
 0x177   : > { %v526_v34 = vmul.f32 %v520_v9, %v516_v33 }
 0x178   : > { %v510_v35 = vpop.f32.mrf.mxu2 }
 0x179   : > { %v528_v36 = vpack.c.bf16 %v526_v34, %v525_v32  ;;  %v511_v37 = vadd.f32 %v510_v35, %v448_v24 }
 0x17b   : > { %530 = vst [vmem:[#allocation2 + $0x4] sm:$0xff] %v528_v36  ;;  %v517_v39 = vmax.f32 %v511_v37, 0.0  ;;  %v600_v40 = vunpack.c.h.b16 %v528_v36  ;;  %v599_v41 = vunpack.c.l.b16 %v528_v36 }
 0x17d   : > { %v527_v42 = vmul.f32 %v521_v38, %v517_v39  ;;  %v604_v43 = vpack.c.b16 %v600_v40, %v600_v40  ;;  %v603_v44 = vpack.c.b16 %v599_v41, %v599_v41 }
 0x17f   : > { %v529_v45 = vpack.c.bf16 %v527_v42, %v527_v42  ;;  %642 = vrot.lane.b32.xlu1 %v604_v43, %s1119_s17  ;;  %618 = vrot.lane.b32.xlu2 %v603_v44, %s1120_s19 }
 0x180   : > { %640 = vrot.lane.b32.xlu0 %v603_v44, %s1119_s17 }
 0x181   : > { %531 = vst [vmem:[#allocation2 + $0xc] sm:$0xf] %v529_v45 }
 0x182   : > { %v532_v46 = vld [vmem:[#allocation2] sm:$0xff] }
 0x183   : > { %v540_v48 = vunpack.c.l.b16 %v532_v46  ;;  %v541_v52 = vunpack.c.h.b16 %v532_v46 }
 0x185   : > { %v1377_v50 = vpack.c.b16 %v540_v48, %v540_v48  ;;  %v1383_v53 = vpack.c.b16 %v541_v52, %v541_v52 }
 0x187   : > { %629 = vrot.lane.b32.xlu1 %v603_v44, %s1121_s8  ;;  %631 = vrot.lane.b32.xlu2 %v604_v43, %s1121_s8 }
 0x188   : > { %620 = vrot.lane.b32.xlu0 %v604_v43, %s1120_s19  ;;  %v537_v47 = vld [vmem:[#allocation2 + $0xc] sm:$0xff] }
 0x189   : > { %v601_v49 = vunpack.c.l.b16 %v537_v47  ;;  %v602_v54 = vunpack.c.h.b16 %v537_v47  ;;  %v533_v56 = vld [vmem:[#allocation2 + $0x8] sm:$0xff] }
 0x18a   : > { %v542_v57 = vunpack.c.l.b16 %v533_v56  ;;  %v535_v59 = vld [vmem:[#allocation2 + $0xc] sm:$0xf]  ;;  %v543_v62 = vunpack.c.h.b16 %v533_v56 }
 0x18b   : > { %v605_v51 = vpack.c.b16 %v601_v49, %v601_v49  ;;  %v606_v55 = vpack.c.b16 %v602_v54, %v602_v54  ;;  %v585_v60 = vunpack.c.l.b16 %v535_v59 }
 0x18c   : > { %v1395_v58 = vpack.c.b16 %v542_v57, %v542_v57  ;;  %v1409_v63 = vpack.c.b16 %v543_v62, %v543_v62 }
 0x18d   : > { %v588_v61 = vpack.c.b16 %v585_v60, %v585_v60 }
 0x18f   : > { %607 = vrot.lane.b32.xlu1 %v603_v44, %s1123_s26  ;;  %589 = vrot.lane.b32.xlu2 %v603_v44, %s1122_s20 }
 0x190   : > { %591 = vrot.lane.b32.xlu0 %v604_v43, %s1122_s20 }
 0x197   : > { %609 = vrot.lane.b32.xlu2 %v604_v43, %s1123_s26  ;;  %559 = vrot.lane.b32.xlu1 %v1377_v50, %s1124_s29 }
 0x198   : > { %644 = vrot.lane.b32.xlu0 %v605_v51, %s1119_s17 }
 0x19f   : > { %561 = vrot.lane.b32.xlu2 %v1383_v53, %s1124_s29  ;;  %570 = vrot.lane.b32.xlu1 %v1377_v50, %s1125_s12 }
 0x1a0   : > { %622 = vrot.lane.b32.xlu0 %v605_v51, %s1120_s19 }
 0x1a7   : > { %572 = vrot.lane.b32.xlu2 %v1383_v53, %s1125_s12  ;;  %548 = vrot.lane.b32.xlu1 %v1377_v50, %s1126_s13 }
 0x1a8   : > { %635 = vrot.lane.b32.xlu0 %v606_v55, %s1121_s8 }
 0x1af   : > { %550 = vrot.lane.b32.xlu2 %v1383_v53, %s1126_s13  ;;  %646 = vrot.lane.b32.xlu1 %v606_v55, %s1119_s17  ;;  %s1128_s17 = smov 19  }
 0x1b0   : > { %563 = vrot.lane.b32.xlu0 %v1395_v58, %s1124_s29 }
 0x1b7   : > { %633 = vrot.lane.b32.xlu2 %v605_v51, %s1121_s8  ;;  %624 = vrot.lane.b32.xlu1 %v606_v55, %s1120_s19  ;;  %s1065_s19 = sshra.s32 %s867_s28, 4  ;;  %s1066_s19 = int_to_ptr.hbm [resolvable:$true] %s1065_s19 }
 0x1b8   : > { %574 = vrot.lane.b32.xlu0 %v1395_v58, %s1125_s12  ;;  %s1067_s8 = scalar_lea.hbm %s1066_s19, 24  ;;  %p1072_p0 = scmp.lt.s32.totalorder %s1066_s19, %s1552_s6 }
 0x1b9   : > { %p1068_p6 = scmp.ne.s32.totalorder %s1066_s19, %s1067_s8 }
 0x1bb   : > { %p1069_p9 = pnand %p1068_p6, %p1214_p11 }
 0x1bd   : > { %p1070_p13 = pneg %p1069_p9 }
 0x1bf   : > { %611 = vrot.lane.b32.xlu2 %v605_v51, %s1123_s26  ;;  %593 = vrot.lane.b32.xlu1 %v588_v61, %s1122_s20 }
 0x1c0   : > { %613 = vrot.lane.b32.xlu0 %v606_v55, %s1123_s26 }
 0x1c7   : > { %576 = vrot.lane.b32.xlu2 %v1409_v63, %s1125_s12  ;;  %565 = vrot.lane.b32.xlu1 %v1409_v63, %s1124_s29  ;;  %s1071_s29 = scalar_lea.hbm %s1552_s6, 48 }
 0x1c8   : > { %552 = vrot.lane.b32.xlu0 %v1395_v58, %s1126_s13  ;;  %p1073_p1 = scmp.lt.s32.totalorder %s1071_s29, %s1067_s8 }
 0x1ca   : > { %p1074_p3 = por %p1073_p1, %p1072_p0 }
 0x1cc   : > { %p1075_p4 = pnand %p1074_p3, %p1070_p13 }
 0x1d0   : > { %554 = vrot.lane.b32.xlu0 %v1409_v63, %s1126_s13  ;;  %s960_s13 = smul.u32 24, %s1250_s11 }
 0x1d2   : > { %s269_s25 = scalar_lea.vmem [#allocation6], %s960_s13 }
 0x1d3   : > { %s864_s18 = sshll.u32 %s269_s25, 4  ;;  %s865_s18 = int_to_ptr.vmem [resolvable:$true] %s864_s18 }
 0x1d9   : > { %v619_v0 = vpop.permute.xlu2 %618 }
 0x1e1   : > { %v632_v1 = vpop.permute.xlu2 %631 }
 0x1e9   : > { %v590_v2 = vpop.permute.xlu2 %589 }
 0x1f1   : > { %v643_v3 = vpop.permute.xlu1 %642  ;;  %v610_v11 = vpop.permute.xlu2 %609 }
 0x1f2   : > { %v641_v4 = vpop.permute.xlu0 %640 }
 0x1f3   : > { %754 = vrot.lane.b32.xlu1 %v641_v4, %s1128_s17  ;;  %v648_v6 = vsel %vm388_vm0, %v641_v4, %v643_v3 }
 0x1f4   : > { %756 = vrot.lane.b32.xlu2 %v648_v6, %s1128_s17  ;;  %v444_v6 = vld [vmem:[%s1548_s2 + $0x8] sm:$0xff] }
 0x1f9   : > { %v630_v7 = vpop.permute.xlu1 %629  ;;  %v562_v18 = vpop.permute.xlu2 %561 }
 0x1fa   : > { %v621_v8 = vpop.permute.xlu0 %620  ;;  %v689_v10 = vsel %vm392_vm1, %v619_v0, %v630_v7  ;;  %v637_v19 = vsel %vm376_vm3, %v630_v7, %v632_v1 }
 0x1fb   : > { %746 = vrot.lane.b32.xlu0 %v689_v10, %s1128_s17  ;;  %v626_v20 = vsel %vm364_vm2, %v619_v0, %v621_v8 }
 0x1fc   : > { %v692_v5 = vsel %vm392_vm1, %v626_v20, %v637_v19 }
 0x201   : > { %v608_v12 = vpop.permute.xlu1 %607  ;;  %v573_v23 = vpop.permute.xlu2 %572 }
 0x202   : > { %v615_v13 = vsel %vm352_vm5, %v608_v12, %v610_v11  ;;  %v592_v14 = vpop.permute.xlu0 %591  ;;  %v677_v15 = vsel %vm392_vm1, %v590_v2, %v608_v12 }
 0x203   : > { %v595_v16 = vsel %vm340_vm4, %v590_v2, %v592_v14  ;;  %738 = vrot.lane.b32.xlu1 %v677_v15, %s1128_s17 }
 0x204   : > { %v680_v17 = vsel %vm392_vm1, %v595_v16, %v615_v13 }
 0x205   : > { %740 = vrot.lane.b32.xlu2 %v680_v17, %s1128_s17 }
 0x209   : > { %v560_v21 = vpop.permute.xlu1 %559  ;;  %v551_v29 = vpop.permute.xlu2 %550 }
 0x20a   : > { %v645_v22 = vpop.permute.xlu0 %644  ;;  %v567_v25 = vsel %vm316_vm6, %v560_v21, %v562_v18 }
 0x20b   : > { %748 = vrot.lane.b32.xlu1 %v692_v5, %s1128_s17  ;;  %v649_v32 = vsel %vm388_vm0, %v643_v3, %v645_v22 }
 0x211   : > { %v571_v24 = vpop.permute.xlu1 %570  ;;  %v634_v37 = vpop.permute.xlu2 %633 }
 0x212   : > { %v623_v26 = vpop.permute.xlu0 %622  ;;  %v578_v27 = vsel %vm328_vm7, %v571_v24, %v573_v23  ;;  %v638_v39 = vsel %vm376_vm3, %v632_v1, %v634_v37 }
 0x213   : > { %v665_v28 = vsel %vm392_vm1, %v567_v25, %v578_v27  ;;  %v627_v38 = vsel %vm364_vm2, %v621_v8, %v623_v26 }
 0x214   : > { %730 = vrot.lane.b32.xlu2 %v665_v28, %s1128_s17  ;;  %v695_v44 = vsel %vm392_vm1, %v627_v38, %v638_v39 }
 0x219   : > { %v549_v30 = vpop.permute.xlu1 %548  ;;  %v612_v46 = vpop.permute.xlu2 %611 }
 0x21a   : > { %v636_v31 = vpop.permute.xlu0 %635  ;;  %v556_v9 = vsel %vm304_vm8, %v549_v30, %v551_v29  ;;  %v616_v49 = vsel %vm352_vm5, %v610_v11, %v612_v46 }
 0x21b   : > { %v653_v33 = vsel %vm392_vm1, %v1377_v50, %v556_v9  ;;  %v639_v41 = vsel %vm376_vm3, %v634_v37, %v636_v31 }
 0x21c   : > { %758 = vrot.lane.b32.xlu2 %v649_v32, %s1128_s17  ;;  %722 = vrot.lane.b32.xlu0 %v653_v33, %s1128_s17 }
 0x221   : > { %v647_v34 = vpop.permute.xlu1 %646  ;;  %v577_v59 = vpop.permute.xlu2 %576 }
 0x222   : > { %v564_v35 = vpop.permute.xlu0 %563  ;;  %v650_v36 = vsel %vm388_vm0, %v645_v22, %v647_v34 }
 0x223   : > { %v568_v50 = vsel %vm316_vm6, %v562_v18, %v564_v35 }
 0x224   : > { %760 = vrot.lane.b32.xlu0 %v650_v36, %s1128_s17 }
 0x229   : > { %v625_v40 = vpop.permute.xlu1 %624 }
 0x22a   : > { %v575_v42 = vpop.permute.xlu0 %574  ;;  %v628_v43 = vsel %vm364_vm2, %v623_v26, %v625_v40  ;;  %v700_v26 = vld [vmem:[%s1550_s4] sm:$0xff] }
 0x22b   : > { %v698_v45 = vsel %vm392_vm1, %v628_v43, %v639_v41  ;;  %v579_v47 = vsel %vm328_vm7, %v573_v23, %v575_v42  ;;  %v580_v61 = vsel %vm328_vm7, %v575_v42, %v577_v59  ;;  %v699_v42 = vld [vmem:[%s1549_s3] sm:$0xf] }
 0x22c   : > { %750 = vrot.lane.b32.xlu0 %v695_v44, %s1128_s17  ;;  %752 = vrot.lane.b32.xlu1 %v698_v45, %s1128_s17  ;;  %v668_v55 = vsel %vm392_vm1, %v568_v50, %v579_v47  ;;  %v484_v47 = vpop.f32.mrf.mxu0 }
 0x231   : > { %v594_v48 = vpop.permute.xlu1 %593 }
 0x232   : > { %v614_v51 = vpop.permute.xlu0 %613  ;;  %v596_v52 = vsel %vm340_vm4, %v592_v14, %v594_v48 }
 0x233   : > { %v617_v54 = vsel %vm352_vm5, %v612_v46, %v614_v51  ;;  %v683_v56 = vsel %vm392_vm1, %v596_v52, %v616_v49  ;;  %v512_v52 = vpop.f32.mrf.mxu2 }
 0x234   : > { %732 = vrot.lane.b32.xlu0 %v668_v55, %s1128_s17  ;;  %v686_v57 = vsel %vm392_vm1, %v594_v48, %v617_v54  ;;  %742 = vrot.lane.b32.xlu1 %v683_v56, %s1128_s17  ;;  %v498_v48 = vpop.f32.mrf.mxu1 }
 0x235   : > { %744 = vrot.lane.b32.xlu2 %v686_v57, %s1128_s17 }
 0x239   : > { %v566_v60 = vpop.permute.xlu1 %565 }
 0x23a   : > { %v553_v62 = vpop.permute.xlu0 %552  ;;  %v569_v0 = vsel %vm316_vm6, %v564_v35, %v566_v60  ;;  %v674_v1 = vsel %vm392_vm1, %v566_v60, %v577_v59 }
 0x23b   : > { %v557_v2 = vsel %vm304_vm8, %v551_v29, %v553_v62  ;;  %v671_v3 = vsel %vm392_vm1, %v569_v0, %v580_v61 }
 0x23c   : > { %v656_v4 = vsel %vm392_vm1, %v1383_v53, %v557_v2  ;;  %736 = vrot.lane.b32.xlu0 %v674_v1, %s1128_s17 }
 0x23d   : > { %724 = vrot.lane.b32.xlu1 %v656_v4, %s1128_s17  ;;  %734 = vrot.lane.b32.xlu2 %v671_v3, %s1128_s17 }
 0x242   : > { %v555_v7 = vpop.permute.xlu0 %554 }
 0x243   : > { %v558_v8 = vsel %vm304_vm8, %v553_v62, %v555_v7  ;;  %v662_v10 = vsel %vm392_vm1, %v1409_v63, %v555_v7 }
 0x244   : > { %v659_v11 = vsel %vm392_vm1, %v1395_v58, %v558_v8  ;;  %452 = vperm.xlu0 %1019, %v444_v6  }
 0x245   : > { %726 = vrot.lane.b32.xlu1 %v659_v11, %s1128_s17  ;;  %728 = vrot.lane.b32.xlu2 %v662_v10, %s1128_s17  ;;  %s851_s17 = scalar_lea.sflag [#allocation5], %s1250_s11 }
 0x24d   : > { %703 = vperm.xlu1 %1020, %v700_v26  }
 0x24e   : > { %v757_v53 = vpop.permute.xlu2 %756 }
 0x25f   : > { %v741_v13 = vpop.permute.xlu2 %740 }
 0x265   : > { %v755_v12 = vpop.permute.xlu1 %754 }
 0x266   : > { %v775_v14 = vsel %vm762_vm10, %v755_v12, %v757_v53 }
 0x267   : > { %v794_v15 = vsel %vm392_vm1, %v775_v14, 0 }
 0x268   : > { %805 = vmatpush.bf16.msra.mxu3 %v794_v15 }
 0x26d   : > { %v747_v19 = vpop.permute.xlu0 %746 }
 0x26e   : > { %v731_v16 = vpop.permute.xlu2 %730 }
 0x275   : > { %v739_v17 = vpop.permute.xlu1 %738 }
 0x276   : > { %v759_v63 = vpop.permute.xlu2 %758  ;;  %v769_v22 = vsel %vm762_vm10, %v739_v17, %v741_v13 }
 0x277   : > { %v776_v18 = vsel %vm762_vm10, %v757_v53, %v759_v63 }
 0x278   : > { %v797_v58 = vsel %vm392_vm1, %v776_v18, 0 }
 0x279   : > { %818 = vmatpush.bf16.msrb.mxu0 %v797_v58 }
 0x27d   : > { %v749_v20 = vpop.permute.xlu1 %748 }
 0x27e   : > { %v772_v21 = vsel %vm762_vm10, %v747_v19, %v749_v20 }
 0x27f   : > { %806 = vmatpush.bf16.msra.mxu3 %v772_v21 }
 0x283   : > { %807 = vmatpush.bf16.msra.mxu3 %v769_v22 }
 0x28e   : > { %v723_v5 = vpop.permute.xlu0 %722 }
 0x28f   : > { %v745_v31 = vpop.permute.xlu2 %744 }
 0x296   : > { %v761_v23 = vpop.permute.xlu0 %760 }
 0x297   : > { %v777_v24 = vsel %vm762_vm10, %v759_v63, %v761_v23  ;;  %v735_v36 = vpop.permute.xlu2 %734 }
 0x298   : > { %v800_v25 = vsel %vm392_vm1, %v777_v24, 0 }
 0x299   : > { %831 = vmatpush.bf16.msrb.mxu1 %v800_v25 }
 0x29e   : > { %v751_v27 = vpop.permute.xlu0 %750  ;;  %v753_v28 = vpop.permute.xlu1 %752 }
 0x29f   : > { %v773_v29 = vsel %vm762_vm10, %v749_v20, %v751_v27  ;;  %v774_v30 = vsel %vm762_vm10, %v751_v27, %v753_v28  ;;  %v729_v43 = vpop.permute.xlu2 %728 }
 0x2a0   : > { %819 = vmatpush.bf16.msrb.mxu0 %v773_v29  ;;  %832 = vmatpush.bf16.msrb.mxu1 %v774_v30 }
 0x2a6   : > { %v733_v9 = vpop.permute.xlu0 %732  ;;  %v743_v32 = vpop.permute.xlu1 %742 }
 0x2a7   : > { %v766_v33 = vsel %vm762_vm10, %v731_v16, %v733_v9  ;;  %v770_v34 = vsel %vm762_vm10, %v741_v13, %v743_v32  ;;  %v771_v35 = vsel %vm762_vm10, %v743_v32, %v745_v31  ;;  %v767_v37 = vsel %vm762_vm10, %v733_v9, %v735_v36 }
 0x2a8   : > { %808 = vmatpush.bf16.msra.mxu3 %v766_v33  ;;  %820 = vmatpush.bf16.msrb.mxu0 %v770_v34 }
 0x2a9   : > { %833 = vmatpush.bf16.msrb.mxu1 %v771_v35 }
 0x2ac   : > { %821 = vmatpush.bf16.msrb.mxu0 %v767_v37 }
 0x2ae   : > { %v737_v38 = vpop.permute.xlu0 %736 }
 0x2af   : > { %v725_v39 = vpop.permute.xlu1 %724  ;;  %v768_v40 = vsel %vm762_vm10, %v735_v36, %v737_v38 }
 0x2b0   : > { %v763_v41 = vsel %vm762_vm10, %v723_v5, %v725_v39  ;;  %834 = vmatpush.bf16.msrb.mxu1 %v768_v40 }
 0x2b1   : > { %809 = vmatpush.bf16.msra.mxu3 %v763_v41 }
 0x2b4   : > { %952 = vmatmul.msk.bf16.vlgmr.msra.gmra.mxu3 %vm460_vm9, %v699_v42 }
 0x2b6   : > { %v453_v49 = vpop.permute.xlu0 %452 }
 0x2b7   : > { %v727_v44 = vpop.permute.xlu1 %726  ;;  %v485_v54 = vadd.f32 %v484_v47, %v453_v49  ;;  %v499_v56 = vadd.f32 %v498_v48, %v453_v49  ;;  %v513_v60 = vadd.f32 %v512_v52, %v453_v49 }
 0x2b8   : > { %v764_v45 = vsel %vm762_vm10, %v725_v39, %v727_v44  ;;  %v765_v46 = vsel %vm762_vm10, %v727_v44, %v729_v43 }
 0x2b9   : > { %822 = vmatpush.bf16.msrb.mxu0 %v764_v45  ;;  %835 = vmatpush.bf16.msrb.mxu1 %v765_v46 }
 0x2bc   : > { %953 = vmatmul.msk.bf16.vlgmr.msrb.gmra.mxu0 %vm460_vm9, %v699_v42  ;;  %954 = vmatmul.msk.bf16.vlgmr.msrb.gmra.mxu1 %vm460_vm9, %v699_v42 }
 0x2bf   : > { %v704_v50 = vpop.permute.xlu1 %703 }
 0x337   : > { %v811_v51 = vpop.f32.mrf.mxu3 }
 0x338   : > { %v812_v55 = vadd.f32 %v811_v51, %v704_v50 }
 0x339   : > { %v824_v57 = vpop.f32.mrf.mxu0  ;;  %v837_v59 = vpop.f32.mrf.mxu1 }
 0x33a   : > { %v841_v61 = vadd.f32 %v812_v55, %v485_v54  ;;  %v825_v62 = vadd.f32 %v824_v57, %v704_v50  ;;  %v838_v0 = vadd.f32 %v837_v59, %v704_v50 }
 0x33c   : > { %v844_v1 = vmax.f32 %v841_v61, 0.0  ;;  %v842_v2 = vadd.f32 %v825_v62, %v499_v56  ;;  %v843_v3 = vadd.f32 %v838_v0, %v513_v60 }
 0x33e   : > { %847 = vst [vmem:[%s269_s25] sm:$0xff] %v844_v1  ;;  %v845_v4 = vmax.f32 %v842_v2, 0.0  ;;  %v846_v6 = vmax.f32 %v843_v3, 0.0 }
 0x33f   : > { %v813_v7 = vpop.f32.mrf.mxu3 }
 0x340   : > { %848 = vst [vmem:[%s269_s25 + $0x8] sm:$0xff] %v845_v4 }
 0x341   : > { %849 = vst [vmem:[%s269_s25 + $0x10] sm:$0xff] %v846_v6  ;;  %v826_v8 = vpop.f32.mrf.mxu0  ;;  %v839_v10 = vpop.f32.mrf.mxu1 }
 0x342   : > { %1078 = shalt.err (!%p1075_p4)
}
 0x343   : > { %964 = dma.vmem_to_hbm [thread:$0]  (%p1214_p11), %s865_s18, 384, %s867_s28, %s851_s17  }
 0x344 PF: > { %s878_s11 = sand.u32 1, %s1105_s21   ;;  %p1558_p7 = scmp.ge.s32.totalorder %s1117_s24, 2 }
 0x345   : > { %s879_s7 = scalar_lea.sflag [#allocation5], %s878_s11 }
 0x346   : > { %p971_p5 = pnand %p1558_p7, %p1218_p12 }
 0x348   : > { %p972_p8 = pneg %p971_p5 }
 0x34a   : > { %1100 = dma.done.wait (%p972_p8), %s879_s7, 384  }
 0x34b   : > { %1102 = vsyncadd (%p972_p8), %s879_s7, 4294966912  ;;  %p19_p10 = scmp.ge.s32.totalorder %s1189_s27, 4   ;;  %s1559_s21 = smov %s1109_s22 }
 0x34c   : > { %s1560_s22 = smov %s1113_s23  ;;  %s1561_s23 = smov %s1201_s30 }
 0x34d   : > { %s1562_s24 = smov %s1189_s27  ;;  %21 = sbr.rel (!%p19_p10) target bundleno = 5 (0x5), region = 89 }
 0x352   :  { %885 = vsyncpa [#allocation4], 1 }
 0x353   :  { %887 = vsyncpa [#allocation4 + $0x1], 1 }
 0x354   :  { %888 = vsyncpa [#allocation5], 1 }
 0x355   :  { %890 = vsyncpa [#allocation5 + $0x1], 1 }

</bundles_post_ra>
